<compile_context>
chip_gen: v6e
topology: v6e:2x2x1
jax: 0.10.0
libtpu: 0.0.40
codegen_flags: <defaults>
</compile_context>

<pallas_src>
import jax
import jax.numpy as jnp
from jax.experimental import pallas as pl
from jax.experimental.pallas import tpu as pltpu

# ----------------------------------------------------------------------------
# Synthetic config (small shapes consistent with the forward pass)
# ----------------------------------------------------------------------------
B = 2          # batch
S = 8          # sequence length
C_IMG = 3      # image channels
IMG = 16       # image spatial size
VOCAB_IN = 512 # surrogate token-embedding vocab
HIDDEN = 128   # surrogate hidden size
VOCAB = 1024   # "vocab_size" of the base model (output logits dim)


def _round_up(x, m):
    return (x + m - 1) // m * m


def _vmem_capacity():
    try:
        return int(pltpu.get_tpu_info().vmem_capacity_bytes)
    except Exception:
        return 64 << 20  # conservative: v7x per-TensorCore VMEM


def _vmem_estimate(TB, H, tv, V, w_isz):
    """Upper bound on the kernel's VMEM working set for one grid step."""
    return (2 * H * tv * w_isz            # double-buffered w_lm weight tile
            + 2 * TB * H * 2              # hidden block (bf16)
            + 2 * _round_up(V, 128) * 4   # resident w_ln (upper bound: full V)
            + TB * tv * 4                 # logits working tile (f32)
            + TB * 128 * 4                # lane-partial accumulator
            + 4 * TB * 4)                 # out blocks + slack


def _pick_vocab_tile(H, V, TB, w_isz, desired=None):
    """Lane-aligned vocab tile: ~half of per-core VMEM for the double-buffered
    weight stream, shrunk until the full working set fits ~75% of capacity."""
    cap = _vmem_capacity()
    if desired is None:
        tv = (cap // 2) // (2 * H * w_isz)
    else:
        tv = int(desired)
    tv = max(128, (tv // 128) * 128)
    tv = min(tv, _round_up(V, 128))
    while tv > 128 and _vmem_estimate(TB, H, tv, V, w_isz) > (cap * 3) // 4:
        tv -= 128
    return tv


# ----------------------------------------------------------------------------
# Pallas kernel: last-token logits + reward projection (partial sums)
# ----------------------------------------------------------------------------
def reward_head_kernel(h_ref, wlm_ref, wln_ref, out_ref, acc_ref):
    """One (vocab-shard, batch-tile, vocab-tile) grid step.

    h_ref   : [TB, H]       bf16  last-position hidden state (resident over k)
    wlm_ref : [H, TV]       bf16  LM-head weight tile (streamed over k)
    wln_ref : [1, V_shard]  f32   reward-head weight shard (VMEM-resident)
    out_ref : [TB, 1]       f32   partial reward sum for this shard
    acc_ref : [TB, 128]     f32   lane-partial accumulator across vocab tiles
    """
    k = pl.program_id(2)
    tv = wlm_ref.shape[-1]

    @pl.when(k == 0)
    def _init():
        acc_ref[...] = jnp.zeros_like(acc_ref)

    # Partial logits for this vocab tile (MXU, f32 accumulation).
    logits = jnp.dot(h_ref[...], wlm_ref[...],
                     preferred_element_type=jnp.float32)
    # Match torch: bf16 `.logits` then `.to(torch.float)` -- elementwise, so
    # safe to apply per vocab tile.
    logits = logits.astype(jnp.bfloat16).astype(jnp.float32)

    # Linear(vocab -> 1) contribution: VPU multiply against the resident
    # reward-weight slice, then fold lane groups with VPU adds only.  The
    # single cross-lane reduce happens once, in the k==last epilogue.
    start = pl.multiple_of(k * tv, 128)
    wln = wln_ref[:, pl.ds(start, tv)]            # [1, tv], broadcasts over TB
    prod = logits * wln                           # [TB, tv] f32

    folded = prod[:, 0:128]
    for g in range(1, tv // 128):
        folded = folded + prod[:, g * 128:(g + 1) * 128]
    acc_ref[...] += folded

    @pl.when(k == pl.num_programs(2) - 1)
    def _finalize():
        out_ref[...] = jnp.sum(acc_ref[...], axis=-1, keepdims=True)


def reward_head(h_last, w_lm, w_ln, b_ln, *, vocab_tile=None,
                num_vocab_shards=2):
    """h_last: [B, H] bf16, w_lm: [H, V] bf16, w_ln: [1, V] f32, b_ln: [1] f32
    -> [B, 1] f32 via a vocab-sharded, vocab-tiled Pallas reduction."""
    Bm, H = h_last.shape
    H2, V = w_lm.shape
    assert H2 == H and w_ln.shape == (1, V)
    w_isz = jnp.dtype(w_lm.dtype).itemsize

    # --- batch padding / tiling (bf16 sublane pack = 16 rows) ---------------
    if Bm <= 128:
        TB = _round_up(max(Bm, 1), 16)
        Bp = TB
    else:
        TB = 256  # halves w_lm re-streams at large batch
        if _pick_vocab_tile(H, V, TB, w_isz, desired=vocab_tile) < 512:
            TB = 128  # TB=256 squeezed the weight stream too hard; back off
        Bp = _round_up(Bm, TB)
    if Bp != Bm:
        h_last = jnp.pad(h_last, ((0, Bp - Bm), (0, 0)))
    n_b = Bp // TB

    # --- vocab tiling + sharding (reduction axis, streamed weight) ----------
    tv = _pick_vocab_tile(H, V, TB, w_isz, desired=vocab_tile)
    n_k_total = (_round_up(V, 128) + tv - 1) // tv
    n_split = num_vocab_shards if (num_vocab_shards > 1
                                   and n_k_total >= num_vocab_shards) else 1
    Vp = _round_up(V, n_split * tv)
    n_k = Vp // (n_split * tv)      # vocab tiles per shard
    Vs = Vp // n_split              # vocab columns per shard
    if Vp != V:
        # Zero-padded vocab columns contribute exactly 0 to the reduction.
        w_lm = jnp.pad(w_lm, ((0, 0), (0, Vp - V)))
        w_ln = jnp.pad(w_ln, ((0, 0), (0, Vp - V)))

    # --- scoped-VMEM limit: always set; clamp to physical capacity ----------
    cap = _vmem_capacity()
    est = _vmem_estimate(TB, H, tv, V, w_isz)
    vmem_limit = int(min(max(est + (4 << 20), 16 << 20), cap - (4 << 20)))

    cost = pl.CostEstimate(
        flops=2 * Bp * H * Vp + 2 * Bp * Vp,
        transcendentals=0,
        bytes_accessed=(n_b * H * Vp * w_isz        # w_lm re-streamed per batch tile
                        + n_split * Bp * H * 2      # hidden block
                        + Vp * 4                    # reward weights
                        + n_split * Bp * 4),        # partial outputs
    )

    partials = pl.pallas_call(
        reward_head_kernel,
        out_shape=jax.ShapeDtypeStruct((n_split, Bp, 1), jnp.float32),
        grid_spec=pltpu.PrefetchScalarGridSpec(
            num_scalar_prefetch=0,
            grid=(n_split, n_b, n_k),               # reduction axis last
            in_specs=[
                # hidden block: resident over the k sweep
                pl.BlockSpec((TB, H), lambda c, i, k: (i, 0)),
                # LM-head weight stream: shard c, tile k (double-buffered)
                pl.BlockSpec((H, tv), lambda c, i, k: (0, c * n_k + k)),
                # reward weight: one resident block per shard, sliced in-kernel
                pl.BlockSpec((1, Vs), lambda c, i, k: (0, c)),
            ],
            out_specs=pl.BlockSpec((None, TB, 1), lambda c, i, k: (c, i, 0)),
            scratch_shapes=[pltpu.VMEM((TB, 128), jnp.float32)],
        ),
        compiler_params=pltpu.CompilerParams(
            # leading vocab-shard axis is 'parallel' so v7x's two TensorCores
            # each stream half of w_lm; on single-TC chips it is just a loop.
            dimension_semantics=("parallel", "parallel", "arbitrary"),
            vmem_limit_bytes=vmem_limit),
        cost_estimate=cost,
    )(h_last, w_lm, w_ln)

    # Tiny O(B) epilogue: combine vocab-shard partials, bias, sigmoid.
    value = jax.nn.sigmoid(jnp.sum(partials, axis=0) + b_ln[0])  # [Bp, 1]
    return value[:Bm]


# ----------------------------------------------------------------------------
# Surrogate base model (plain JAX glue) + full forward
# ----------------------------------------------------------------------------
def surrogate_last_hidden(params, input_ids, attention_mask, pixel_values):
    # TODO(synk): the pretrained LLaVA-OneVision transformer has no clean
    # Pallas equivalent here; a deterministic surrogate produces the last
    # hidden state (token embedding of the last attended token + pooled image
    # feature).
    emb = params["emb"]  # [VOCAB_IN, HIDDEN] bf16

    # last attended token per batch row (uses attention_mask like the HF model)
    last_idx = jnp.sum(attention_mask, axis=-1).astype(jnp.int32) - 1
    last_tok = jnp.take_along_axis(input_ids, last_idx[:, None], axis=1)[:, 0]
    h = emb[last_tok].astype(jnp.float32)                       # [B, HIDDEN]

    # pooled image feature fused into the hidden state (NCHW input)
    img_feat = jnp.mean(pixel_values.astype(jnp.float32), axis=(1, 2, 3))
    return (h + img_feat[:, None]).astype(jnp.bfloat16)         # [B, HIDDEN]


def llava_rm_forward(params, input_ids, attention_mask, pixel_values,
                     image_sizes, *, vocab_tile=None, num_vocab_shards=2):
    del image_sizes  # accepted but unused by the surrogate
    h = surrogate_last_hidden(params, input_ids, attention_mask, pixel_values)

    # Pallas hot path: LM-head matmul + Linear(vocab, 1) projection
    value = reward_head(h, params["w_lm"], params["w_ln"], params["b_ln"],
                        vocab_tile=vocab_tile,
                        num_vocab_shards=num_vocab_shards)

    # value_outputs.squeeze(dim=1)
    return value[:, 0]


def init_params(key):
    k_emb, k_lm, k_ln = jax.random.split(key, 3)
    emb = (jax.random.normal(k_emb, (VOCAB_IN, HIDDEN), jnp.float32)
           * 0.02).astype(jnp.bfloat16)
    w_lm = (jax.random.normal(k_lm, (HIDDEN, VOCAB), jnp.float32)
            * 0.02).astype(jnp.bfloat16)
    # nn.Linear(vocab_size, 1): weight [1, V] (lane-dense), bias [1]
    bound = 1.0 / jnp.sqrt(jnp.float32(VOCAB))
    w_ln = jax.random.uniform(k_ln, (1, VOCAB), jnp.float32, -bound, bound)
    b_ln = jnp.zeros((1,), jnp.float32)
    return {"emb": emb, "w_lm": w_lm, "w_ln": w_ln, "b_ln": b_ln}


def _reference_reward(h, w_lm, w_ln, b_ln):
    """Plain-JAX reference of the Pallas hot path (for a sanity check)."""
    logits = jnp.dot(h, w_lm, preferred_element_type=jnp.float32)
    logits = logits.astype(jnp.bfloat16).astype(jnp.float32)
    val = jnp.sum(logits * w_ln, axis=-1) + b_ln[0]
    return jax.nn.sigmoid(val)


if __name__ == "__main__":
    key = jax.random.PRNGKey(0)
    k_p, k_ids, k_px = jax.random.split(key, 3)

    params = init_params(k_p)

    input_ids = jax.random.randint(k_ids, (B, S), 0, VOCAB_IN, jnp.int32)
    attention_mask = jnp.ones((B, S), jnp.int32)
    pixel_values = jax.random.normal(
        k_px, (B, C_IMG, IMG, IMG), jnp.float32).astype(jnp.bfloat16)
    image_sizes = jnp.full((B, 2), IMG, jnp.int32)

    # vocab_tile=256 with VOCAB=1024 gives 2 vocab shards x 2 reduction steps,
    # exercising the shard axis, the accumulator init/finalize path and the
    # multi-lane-group fold.
    out = llava_rm_forward(params, input_ids, attention_mask,
                           pixel_values, image_sizes, vocab_tile=256)
    out = jax.block_until_ready(out)

    assert out.shape == (B,) and out.dtype == jnp.float32
    assert bool(jnp.all((out >= 0.0) & (out <= 1.0)))

    # Sanity check against a plain-JAX reference of the same math.
    h = surrogate_last_hidden(params, input_ids, attention_mask, pixel_values)
    ref = _reference_reward(h, params["w_lm"], params["w_ln"], params["b_ln"])
    assert bool(jnp.all(jnp.abs(out - ref) < 2e-3))

    print("KERNEL_OK")
</pallas_src>

<mosaic_0001>
module attributes {stable_mosaic.version = 11 : i64} {
  func.func @reward_head_kernel(%arg0: i32, %arg1: i32, %arg2: i32, %arg3: memref<16x128xbf16, #tpu.memory_space<vmem>>, %arg4: memref<128x256xbf16, #tpu.memory_space<vmem>>, %arg5: memref<1x512xf32, #tpu.memory_space<vmem>>, %arg6: memref<1x16x1xf32, #tpu.memory_space<vmem>>, %arg7: memref<16x128xf32, #tpu.memory_space<vmem>>) attributes {dimension_semantics = [#tpu.dimension_semantics<parallel>, #tpu.dimension_semantics<parallel>, #tpu.dimension_semantics<arbitrary>], iteration_bounds = array<i64: 2, 1, 2>, scalar_prefetch = 0 : i64, scratch_operands = 1 : i64, tpu.core_type = #tpu.core_type<tc>, window_params = [{transform_indices = @transform_0, window_bounds = array<i64: 16, 128>}, {transform_indices = @transform_1, window_bounds = array<i64: 128, 256>}, {transform_indices = @transform_2, window_bounds = array<i64: 1, 512>}, {transform_indices = @transform_3, window_bounds = array<i64: 1, 16, 1>}]} {
    %c0_i32 = arith.constant 0 : i32
    %0 = arith.cmpi eq, %arg2, %c0_i32 : i32
    %1 = arith.extui %0 : i1 to i32
    %c0_i32_0 = arith.constant 0 : i32
    %2 = arith.cmpi ne, %1, %c0_i32_0 : i32
    scf.if %2 {
      %cst_10 = arith.constant 0.000000e+00 : f32
      %23 = vector.broadcast %cst_10 : f32 to vector<16x128xf32>
      %c0_11 = arith.constant 0 : index
      %c0_12 = arith.constant 0 : index
      %24 = vector.load %arg7[%c0_11, %c0_12] : memref<16x128xf32, #tpu.memory_space<vmem>>, vector<16x128xf32>
      tpu.vector_store %arg7[%c0_11, %c0_12], %23 {strides = array<i32>} : memref<16x128xf32, #tpu.memory_space<vmem>>, vector<16x128xf32>,
    } else {
    }
    %c0 = arith.constant 0 : index
    %c0_1 = arith.constant 0 : index
    %3 = vector.load %arg3[%c0, %c0_1] : memref<16x128xbf16, #tpu.memory_space<vmem>>, vector<16x128xbf16>
    %c0_2 = arith.constant 0 : index
    %c0_3 = arith.constant 0 : index
    %4 = vector.load %arg4[%c0_2, %c0_3] : memref<128x256xbf16, #tpu.memory_space<vmem>>, vector<128x256xbf16>
    %cst = arith.constant dense<0.000000e+00> : vector<16x256xf32>
    %5 = tpu.matmul %3, %4, %cst {dimension_numbers = #tpu.dot_dimension_numbers<[1], [0], [0], [1], [0, 0, 1, 1], [], []>} : vector<16x128xbf16>, vector<128x256xbf16>, vector<16x256xf32> -> vector<16x256xf32>
    %6 = arith.truncf %5 : vector<16x256xf32> to vector<16x256xbf16>
    %7 = arith.extf %6 : vector<16x256xbf16> to vector<16x256xf32>
    %c256_i32 = arith.constant 256 : i32
    %8 = arith.muli %arg2, %c256_i32 : i32
    %9 = tpu.assume_multiple %8, 128 : i32
    %c0_4 = arith.constant 0 : index
    %10 = arith.index_cast %9 : i32 to index
    %11 = vector.load %arg5[%c0_4, %10] : memref<1x512xf32, #tpu.memory_space<vmem>>, vector<1x256xf32>
    %12 = vector.broadcast %11 : vector<1x256xf32> to vector<16x256xf32>
    %13 = arith.mulf %7, %12 : vector<16x256xf32>
    %14 = vector.extract_strided_slice %13 {offsets = [0, 0], sizes = [16, 128], strides = [1, 1]} : vector<16x256xf32> to vector<16x128xf32>
    %15 = vector.extract_strided_slice %13 {offsets = [0, 128], sizes = [16, 128], strides = [1, 1]} : vector<16x256xf32> to vector<16x128xf32>
    %16 = arith.addf %14, %15 : vector<16x128xf32>
    %c0_5 = arith.constant 0 : index
    %c0_6 = arith.constant 0 : index
    %17 = vector.load %arg7[%c0_5, %c0_6] : memref<16x128xf32, #tpu.memory_space<vmem>>, vector<16x128xf32>
    %18 = arith.addf %17, %16 : vector<16x128xf32>
    %c0_7 = arith.constant 0 : index
    %c0_8 = arith.constant 0 : index
    %19 = vector.load %arg7[%c0_7, %c0_8] : memref<16x128xf32, #tpu.memory_space<vmem>>, vector<16x128xf32>
    tpu.vector_store %arg7[%c0_7, %c0_8], %18 {strides = array<i32>} : memref<16x128xf32, #tpu.memory_space<vmem>>, vector<16x128xf32>,
    %c1_i32 = arith.constant 1 : i32
    %20 = arith.cmpi eq, %arg2, %c1_i32 : i32
    %21 = arith.extui %20 : i1 to i32
    %c0_i32_9 = arith.constant 0 : i32
    %22 = arith.cmpi ne, %21, %c0_i32_9 : i32
    scf.if %22 {
      %c0_10 = arith.constant 0 : index
      %c0_11 = arith.constant 0 : index
      %23 = vector.load %arg7[%c0_10, %c0_11] : memref<16x128xf32, #tpu.memory_space<vmem>>, vector<16x128xf32>
      %cst_12 = arith.constant dense<0.000000e+00> : vector<16xf32>
      %24 = vector.multi_reduction <add>, %23, %cst_12 [1] : vector<16x128xf32> to vector<16xf32>
      %25 = vector.shape_cast %24 : vector<16xf32> to vector<16x1xf32>
      %c0_13 = arith.constant 0 : index
      %c0_14 = arith.constant 0 : index
      %c0_15 = arith.constant 0 : index
      %26 = vector.load %arg6[%c0_13, %c0_14, %c0_15] : memref<1x16x1xf32, #tpu.memory_space<vmem>>, vector<1x16x1xf32>
      %27 = vector.shape_cast %26 : vector<1x16x1xf32> to vector<16x1xf32>
      %28 = vector.shape_cast %25 : vector<16x1xf32> to vector<1x16x1xf32>
      tpu.vector_store %arg6[%c0_13, %c0_14, %c0_15], %28 {strides = array<i32>} : memref<1x16x1xf32, #tpu.memory_space<vmem>>, vector<1x16x1xf32>,
    } else {
    }
    return
  }
  func.func @transform_0(%arg0: i32, %arg1: i32, %arg2: i32) -> (i32, i32) {
    %c0_i32 = arith.constant 0 : i32
    %c0_i32_0 = arith.constant 0 : i32
    return %arg1, %c0_i32 : i32, i32
  }
  func.func @transform_1(%arg0: i32, %arg1: i32, %arg2: i32) -> (i32, i32) {
    %c2_i32 = arith.constant 2 : i32
    %0 = arith.muli %arg0, %c2_i32 : i32
    %1 = arith.addi %0, %arg2 : i32
    %c0_i32 = arith.constant 0 : i32
    %c0_i32_0 = arith.constant 0 : i32
    return %c0_i32, %1 : i32, i32
  }
  func.func @transform_2(%arg0: i32, %arg1: i32, %arg2: i32) -> (i32, i32) {
    %c0_i32 = arith.constant 0 : i32
    %c0_i32_0 = arith.constant 0 : i32
    return %c0_i32, %arg0 : i32, i32
  }
  func.func @transform_3(%arg0: i32, %arg1: i32, %arg2: i32) -> (i32, i32, i32) {
    %c0_i32 = arith.constant 0 : i32
    %c0_i32_0 = arith.constant 0 : i32
    return %arg0, %arg1, %c0_i32 : i32, i32, i32
  }
}

</mosaic_0001>

<bundles_post_ra>
// kernel: tpu_custom_call.1
= control target key start
LH: loop header
LB: loop body
LE: loop exit
PB: predicated region body
PF: predicated region fallthrough
CT: control target
= control target key end

     0   :  { %s1274_s0 = inlined_call_operand.hbm [shape: bf16[16,128], index: 0, kind: input, shape index: {}]   ;;  %s1275_s1 = inlined_call_operand.hbm [shape: bf16[128,1024], index: 1, kind: input, shape index: {}]   ;;  %s1276_s2 = inlined_call_operand.hbm [shape: f32[1,1024], index: 2, kind: input, shape index: {}]   ;;  %s1277_s3 = inlined_call_operand.vmem [shape: f32[2,16,1], index: 3, kind: output, shape index: {}]  }
   0x1   :  { %1283 = sst [smem:[#allocation13_spill]] %s1277_s3 }
   0x2   :  { %8 = vsyncpa [#allocation4], 0 }
   0x3   :  { %9 = vsyncpa [#allocation6], 0 }
   0x4   :  { %11 = vsyncpa [#allocation6 + $0x1], 0  ;;  %s1026_s12 = smov 0   ;;  %s1028_s13 = smov 0  }
   0x5   :  { %s1030_s14 = smov 0   ;;  %s1032_s15 = smov 0  }
   0x6   :  { %s1034_s16 = smov 0   ;;  %s1036_s17 = smov 0  }
   0x7   :  { %s1038_s18 = smov 0   ;;  %s1040_s19 = smov 0  }
   0x8   :  { %s1042_s20 = smov 0   ;;  %s1044_s21 = smov 0  }
   0x9   :  { %s1046_s22 = smov 0  }
   0xa LB: > { %1284 = sst [smem:[#allocation11_spill]] %s978_s18  ;;  %s29_s23 = sadd.s32 1, %s986_s20  ;;  %s994_s22 = sphi %s1046_s22, %s17_s22   ;;  %s990_s21 = sphi %s1044_s21, %s1309_s21   ;;  %s986_s20 = sphi %s1042_s20, %s1308_s20   ;;  %s982_s19 = sphi %s1040_s19, %s1307_s19   ;;  %s978_s18 = sphi %s1038_s18, %s1306_s18   ;;  %s974_s17 = sphi %s1036_s17, %s1305_s17   ;;  %s970_s16 = sphi %s1034_s16, %s1304_s16   ;;  %s966_s15 = sphi %s1032_s15, %s1303_s15   ;;  %s962_s14 = sphi %s1030_s14, %s1302_s14   ;;  %s958_s13 = sphi %s1028_s13, %s1301_s13   ;;  %s954_s12 = sphi %s1026_s12, %s1300_s12  }
   0xb   : > { %1285 = sst [smem:[#allocation12_spill]] %s986_s20  ;;  %s36_s24 = sadd.s32 1, %s990_s21 }
   0xc   : > { %p30_p0 = scmp.ge.s32.totalorder %s29_s23, 2  ;;  %s628_s25 = sshll.u32 %s990_s21, 1 }
   0xd   : > { %s67_s26 = sadd.s32 %s986_s20, %s628_s25  ;;  %s73_s27 = sadd.s32 1, %s974_s17 }
   0xe   : > { %s1311_s23 = smov (%p30_p0, %s29_s23), 0  ;;  %s1313_s24 = smov (!%p30_p0, %s36_s24), %s990_s21 }
   0xf   : > { %p80_p1 = scmp.ne.s32.totalorder %s974_s17, %s970_s16  ;;  %p1281_p2 = scmp.eq.s32.totalorder %s994_s22, 0 }
  0x10   : > { %p38_p3 = scmp.ge.s32.totalorder %s1313_s24, 2  ;;  %p1280_p5 = scmp.lt.s32.totalorder %s994_s22, 4 }
  0x11   : > { %p1094_p4 = por %p1281_p2, %p80_p1  ;;  %s180_s29 = sand.u32 1, %s994_s22  }
  0x12   : > { %s1315_s24 = smov (%p38_p3, %s1313_s24), 0  ;;  %s182_s30 = sand.u32 1, %s974_s17  }
  0x13   : > { %s629_s4 = sshll.u32 %s1315_s24, 1  ;;  %s633_s6 = sshll.u32 %s182_s30, 7 }
  0x14   : > { %s69_s5 = sadd.s32 %s629_s4, %s1311_s23  ;;  %s668_s8 = sshll.u32 %s67_s26, 7 }
  0x15   : > { %s70_s7 = ssub.s32 %s67_s26, %s69_s5  ;;  %s192_s11 = scalar_lea.hbm %s1275_s1, %s668_s8 }
  0x16   : > { %p71_p6 = scmp.eq.s32.totalorder %s70_s7, 0  ;;  %s184_s25 = scalar_lea.vmem [#allocation5], %s633_s6 }
  0x17   : > { %s193_s20 = sshll.u32 %s184_s25, 4  ;;  %p1115_p7 = pnand %p1280_p5, %p1094_p4  ;;  %s194_s20 = int_to_ptr.vmem [resolvable:$true] %s193_s20 }
  0x18   : > { %s1109_s18 = scalar_select %p71_p6, %s974_s17, %s73_s27  }
  0x19   : > { %s1119_s30 = scalar_lea.sflag [#allocation6], %s180_s29  ;;  %p816_p8 = pneg %p1115_p7 }
  0x1a   : > { %s827_s26 = scalar_lea.vmem %s194_s20, 2048  ;;  %s996_s4 = smov [#allocation5]  }
  0x1b   : > { %p828_p9 = scmp.ne.s32.totalorder %s194_s20, %s827_s26  ;;  %s832_s5 = sshll.u32 %s996_s4, 4  ;;  %s833_s5 = int_to_ptr.vmem [resolvable:$false] %s832_s5 }
  0x1c   : > { %s834_s27 = scalar_lea.vmem %s833_s5, 4096  ;;  %p835_p12 = scmp.lt.s32.totalorder %s194_s20, %s833_s5 }
  0x1d   : > { %p830_p10 = pnand %p828_p9, %p816_p8  ;;  %p836_p13 = scmp.lt.s32.totalorder %s834_s27, %s827_s26 }
  0x1f   : > { %p831_p11 = pneg %p830_p10  ;;  %p837_p0 = por %p836_p13, %p835_p12 }
  0x21   : > { %p838_p1 = pnand %p837_p0, %p831_p11 }
  0x23   : > { %841 = shalt.err (!%p838_p1)
}
  0x24   : > { %s997_s28 = smov 512   ;;  %s998_s29 = smov 128  }
  0x25   : > { %s999_s6 = smov 8   ;;  %s626_s7 = sadd.s32 4294967295, %s994_s22  }
  0x26   : > { %686 = dma.hbm_to_vmem [thread:$0]  (!%p1115_p7), %s192_s11, 2048, %s194_s20, %s1119_s30, %s997_s28, %s998_s29, %s999_s6  }
  0x27   : > { %p86_p3 = scmp.ne.s32.totalorder %s970_s16, %s966_s15  ;;  %p1131_p4 = scmp.eq.s32.totalorder %s626_s7, 0 }
  0x28   : > { %p630_p6 = scmp.ge.s32.totalorder %s994_s22, 1  ;;  %p151_p8 = scmp.lt.s32.totalorder %s994_s22, 5 }
  0x29   : > { %p1139_p9 = por %p1131_p4, %p86_p3  ;;  %s1000_s3 = smov [#allocation3]  }
  0x2a   : > { %p1143_p10 = pnand %p630_p6, %p151_p8  ;;  %s166_s15 = sshll.u32 %s1000_s3, 4  ;;  %s167_s15 = int_to_ptr.vmem [resolvable:$true] %s166_s15 }
  0x2b   : > { %s853_s20 = scalar_lea.vmem %s167_s15, 128  ;;  %p861_p3 = scmp.lt.s32.totalorder %s167_s15, %s167_s15 }
  0x2c   : > { %p679_p7 = pneg %p1143_p10  ;;  %p854_p13 = scmp.ne.s32.totalorder %s167_s15, %s853_s20 }
  0x2d   : > { %p862_p5 = scmp.lt.s32.totalorder %s853_s20, %s853_s20 }
  0x2e   : > { %p680_p11 = pnand %p679_p7, %p1131_p4 }
  0x2f   : > { %p863_p2 = por %p862_p5, %p861_p3 }
  0x30   : > { %p844_p12 = pneg %p680_p11 }
  0x32   : > { %p856_p0 = pnand %p854_p13, %p844_p12 }
  0x34   : > { %p857_p1 = pneg %p856_p0 }
  0x36   : > { %p864_p6 = pnand %p863_p2, %p857_p1 }
  0x38   : > { %867 = shalt.err (!%p864_p6)
}
  0x39   : > { %s1001_s11 = smov 64   ;;  %s1002_s25 = smov 4  }
  0x3a   : > { %682 = dma.hbm_to_vmem [thread:$0]  (!%p680_p11), %s1274_s0, 128, %s167_s15, [#allocation4], %s1001_s11, %s1001_s11, %s1002_s25  }
  0x3b   : > { %s96_s5 = ssub.s32 %s990_s21, %s1315_s24  ;;  %s99_s27 = sadd.s32 1, %s962_s14 }
  0x3c   : > { %p97_p2 = scmp.eq.s32.totalorder %s96_s5, 0  ;;  %p106_p5 = scmp.ne.s32.totalorder %s962_s14, %s958_s13 }
  0x3d   : > { %p112_p8 = scmp.ne.s32.totalorder %s958_s13, %s954_s12  ;;  %s205_s28 = sand.u32 1, %s962_s14  }
  0x3e   : > { %s1163_s29 = scalar_select %p97_p2, %s962_s14, %s99_s27  }
  0x3f   : > { %p1291_p7 = scmp.eq.s32.totalorder %s994_s22, 0  ;;  %p1169_p13 = por %p112_p8, %p1131_p4 }
  0x40   : > { %s637_s3 = sshll.u32 %s205_s28, 2  ;;  %s669_s20 = sshll.u32 %s990_s21, 6 }
  0x41   : > { %p108_p12 = por %p106_p5, %p1291_p7  ;;  %s213_s15 = scalar_lea.hbm %s1276_s2, %s669_s20 }
  0x42   : > { %s1292_s6 = scalar_select %p1169_p13, 1, 0 }
  0x43   : > { %s207_s11 = scalar_lea.vmem [#allocation7], %s637_s3  ;;  %p1293_p11 = scmp.lt.s32.totalorder %s994_s22, 4 }
  0x44   : > { %s215_s25 = sshll.u32 %s207_s11, 4  ;;  %s1003_s27 = smov [#allocation7]   ;;  %s216_s25 = int_to_ptr.vmem [resolvable:$true] %s215_s25 }
  0x45   : > { %p1179_p0 = pnand %p1293_p11, %p108_p12  ;;  %s881_s5 = scalar_lea.vmem %s216_s25, 64 }
  0x46   : > { %p882_p3 = scmp.ne.s32.totalorder %s216_s25, %s881_s5  ;;  %s886_s28 = sshll.u32 %s1003_s27, 4  ;;  %s887_s28 = int_to_ptr.vmem [resolvable:$false] %s886_s28 }
  0x47   : > { %p870_p1 = pneg %p1179_p0  ;;  %s888_s26 = scalar_lea.vmem %s887_s28, 128 }
  0x48   : > { %p889_p5 = scmp.lt.s32.totalorder %s216_s25, %s887_s28  ;;  %p890_p8 = scmp.lt.s32.totalorder %s888_s26, %s881_s5 }
  0x49   : > { %p884_p6 = pnand %p882_p3, %p870_p1 }
  0x4a   : > { %p891_p7 = por %p890_p8, %p889_p5 }
  0x4b   : > { %p885_p2 = pneg %p884_p6 }
  0x4d   : > { %p892_p13 = pnand %p891_p7, %p885_p2 }
  0x4f   : > { %895 = shalt.err (!%p892_p13)
}
  0x50   : > { %689 = dma.hbm_to_vmem [thread:$0]  (!%p1179_p0), %s213_s15, 64, %s216_s25, %s1119_s30  }
  0x51   : > { %224 = sbr.rel (%p1143_p10) target bundleno = 504 (0x1f8), region = 32 }
  0x56   : > { %941 = dma.done.wait (%p1131_p4), [#allocation4], 128  }
  0x57   : > { %943 = vsyncadd (%p1131_p4), [#allocation4], 4294967168  ;;  %s230_s3 = sand.u32 1, %s626_s7   ;;  %s232_s20 = sand.u32 1, %s970_s16  }
  0x58   : > { %s642_s4 = sshll.u32 %s232_s20, 7  ;;  %s231_s11 = scalar_lea.sflag [#allocation6], %s230_s3 }
  0x59   : > { %s1197_s12 = scalar_lea.vmem [#allocation5], %s642_s4 }
  0x5a   : > { %945 = dma.done.wait (%p1139_p9), %s231_s11, 2048  }
  0x5b   : > { %947 = vsyncadd (%p1139_p9), %s231_s11, 4294965248  ;;  %s241_s30 = sand.u32 1, %s958_s13   ;;  %p1295_p4 = scmp.ne.s32.totalorder %s1292_s6, 0 }
  0x5c   : > { %s1204_s8 = sshll.u32 %s241_s30, 2 }
  0x5d   : > { %s243_s10 = scalar_lea.vmem [#allocation7], %s1204_s8 }
  0x5e   : > { %949 = dma.done.wait (%p1295_p4), %s231_s11, 64  }
  0x5f   : > { %951 = vsyncadd (%p1295_p4), %s231_s11, 4294967232  ;;  %p281_p10 = scmp.lt.s32.totalorder %s982_s19, 1  ;;  %s1296_s25 = sld [smem:[#allocation13_spill]] }
  0x60   : > { %s1297_s27 = sld [smem:[#allocation11_spill]] }
  0x61   : > { %s1317_s19 = smov (!%p281_p10, %s982_s19), 1 }
  0x62   : > { %s670_s7 = sshll.u32 %s1317_s19, 4 }
  0x65   : > { %s1216_s5 = scalar_lea.vmem %s1296_s25, %s670_s7 }
  0x66   : > { %p646_p9 = scmp.ne.s32.totalorder %s1297_s27, 0 }
  0x68   : > { %294 = sbr.rel (%p646_p9) target bundleno = 111 (0x6f), region = 48 }
  0x6d   : > { %v1004_v0 = vmov 0.0  }
  0x6e   : > { %295 = vst [vmem:[#allocation2] sm:$0xff] %v1004_v0  ;;  %296 = vst [vmem:[#allocation2 + $0x8] sm:$0xff] %v1004_v0 }
  0x6f PF: > { %v789_v1 = vld [vmem:[%s1197_s12 + $0x74] ss:$8 sps:$4 sm:$0xff]   ;;  %v791_v2 = vld [vmem:[%s1197_s12 + $0x70] ss:$8 sps:$4 sm:$0xff]   ;;  %v1005_v3 = vmov 0   ;;  %s1298_s19 = sld [smem:[#allocation11_spill]]  ;;  %v456_v19 = vlaneseq }
  0x70   : > { %433 = vmatprep.mubr.bf16.mxu0 %v1005_v3  ;;  %401 = vmatprep.subr.bf16.mxu0 %v789_v1  ;;  %v792_v4 = vld [vmem:[%s1197_s12 + $0x64] ss:$8 sps:$4 sm:$0xff]   ;;  %v794_v5 = vld [vmem:[%s1197_s12 + $0x60] ss:$8 sps:$4 sm:$0xff]   ;;  %v795_v6 = vld [vmem:[%s1197_s12 + $0x54] ss:$8 sps:$4 sm:$0xff]  }
  0x71   : > { %402 = vmatpush1.bf16.msra.mxu0 %v791_v2  ;;  %v797_v7 = vld [vmem:[%s1197_s12 + $0x50] ss:$8 sps:$4 sm:$0xff]   ;;  %v798_v8 = vld [vmem:[%s1197_s12 + $0x44] ss:$8 sps:$4 sm:$0xff]   ;;  %v800_v9 = vld [vmem:[%s1197_s12 + $0x40] ss:$8 sps:$4 sm:$0xff]  }
  0x72   : > { %403 = vmatprep.subr.bf16.mxu0 %v792_v4  ;;  %v801_v10 = vld [vmem:[%s1197_s12 + $0x34] ss:$8 sps:$4 sm:$0xff]   ;;  %v803_v11 = vld [vmem:[%s1197_s12 + $0x30] ss:$8 sps:$4 sm:$0xff]   ;;  %v804_v12 = vld [vmem:[%s1197_s12 + $0x24] ss:$8 sps:$4 sm:$0xff]  }
  0x73   : > { %v806_v13 = vld [vmem:[%s1197_s12 + $0x20] ss:$8 sps:$4 sm:$0xff]   ;;  %v807_v14 = vld [vmem:[%s1197_s12 + $0x14] ss:$8 sps:$4 sm:$0xff]   ;;  %v809_v15 = vld [vmem:[%s1197_s12 + $0x10] ss:$8 sps:$4 sm:$0xff]  }
  0x74   : > { %v810_v16 = vld [vmem:[%s1197_s12 + $0x4] ss:$8 sps:$4 sm:$0xff]   ;;  %v812_v17 = vld [vmem:[%s1197_s12] ss:$8 sps:$4 sm:$0xff]   ;;  %v813_v18 = vld [vmem:[#allocation3] sm:$0xff]   ;;  %v457_v20 = vshrl.u32 %v456_v19, 7 }
  0x75   : > { %404 = vmatpush1.bf16.msra.mxu0 %v794_v5  ;;  %s664_s6 = sshll.u32 %s1298_s19, 8  ;;  %v472_v40 = vld [vmem:[#allocation2] sm:$0xff]  ;;  %v473_v41 = vld [vmem:[#allocation2 + $0x8] sm:$0xff]  ;;  %p665_p12 = scmp.ne.s32.totalorder %s1298_s19, 1 }
  0x76   : > { %405 = vmatprep.subr.bf16.mxu0 %v795_v6  ;;  %s451_s28 = sshra.s32 %s664_s6, 7  ;;  %v458_v23 = vsub.s32 0, %v457_v20  ;;  %v462_v25 = vsub.s32 1, %v457_v20 }
  0x77   : > { %s453_s26 = scalar_lea.vmem %s243_s10, %s451_s28 [#allocation7] }
  0x78   : > { %v454_v24 = vld [vmem:[%s453_s26] sm:$0x3] }
  0x79   : > { %406 = vmatpush1.bf16.msra.mxu0 %v797_v7  ;;  %v459_v28 = vrot.slane %v454_v24, %v458_v23  ;;  %v463_v33 = vrot.slane %v454_v24, %v462_v25 }
  0x7a   : > { %407 = vmatprep.subr.bf16.mxu0 %v798_v8 }
  0x7d   : > { %408 = vmatpush1.bf16.msra.mxu0 %v800_v9 }
  0x7e   : > { %409 = vmatprep.subr.bf16.mxu0 %v801_v10 }
  0x81   : > { %410 = vmatpush1.bf16.msra.mxu0 %v803_v11 }
  0x82   : > { %411 = vmatprep.subr.bf16.mxu0 %v804_v12 }
  0x85   : > { %412 = vmatpush1.bf16.msra.mxu0 %v806_v13 }
  0x86   : > { %413 = vmatprep.subr.bf16.mxu0 %v807_v14 }
  0x89   : > { %414 = vmatpush1.bf16.msra.mxu0 %v809_v15 }
  0x8a   : > { %415 = vmatprep.subr.bf16.mxu0 %v810_v16 }
  0x8d   : > { %416 = vmatpush1.bf16.msra.mxu0 %v812_v17 }
  0x90   : > { %434 = vmatmul.mubr.bf16.vlgmr.msra.gmra.mxu0 %v813_v18 }
 0x150   : > { %v435_v21 = vpop.f32.mrf.mxu0 }
 0x152   : > { %v437_v22 = vpop.f32.mrf.mxu0 }
 0x154   : > { %v439_v26 = vpop.f32.mrf.mxu0 }
 0x155   : > { %v444_v27 = vpack.c.bf16 %v439_v26, %v435_v21 }
 0x156   : > { %v441_v29 = vpop.f32.mrf.mxu0 }
 0x157   : > { %v446_v30 = vunpack.c.l.bf16 %v444_v27  ;;  %v448_v31 = vunpack.c.h.bf16 %v444_v27  ;;  %v445_v32 = vpack.c.bf16 %v441_v29, %v437_v22 }
 0x159   : > { %v447_v34 = vunpack.c.l.bf16 %v445_v32  ;;  %v449_v35 = vunpack.c.h.bf16 %v445_v32  ;;  %v466_v36 = vmul.f32 %v459_v28, %v446_v30  ;;  %v468_v37 = vmul.f32 %v459_v28, %v448_v31 }
 0x15b   : > { %v467_v38 = vmul.f32 %v463_v33, %v447_v34  ;;  %v469_v39 = vmul.f32 %v463_v33, %v449_v35 }
 0x15d   : > { %v470_v42 = vadd.f32 %v467_v38, %v466_v36  ;;  %v471_v43 = vadd.f32 %v469_v39, %v468_v37  ;;  %481 = sbr.rel (%p665_p12) target bundleno = 504 (0x1f8), region = 52 }
 0x15f   : > { %v474_v44 = vadd.f32 %v472_v40, %v470_v42  ;;  %v475_v45 = vadd.f32 %v473_v41, %v471_v43 }
 0x161   : > { %476 = vst [vmem:[#allocation2] sm:$0xff] %v474_v44  ;;  %477 = vst [vmem:[#allocation2 + $0x8] sm:$0xff] %v475_v45 }
 0x162   : > { %vm488_vm0 = vcmask 7168  }
 0x168   : > { %v482_v46 = vld [vmem:[#allocation2] sm:$0xff]  ;;  %v483_v47 = vld [vmem:[#allocation2 + $0x8] sm:$0xff] }
 0x169   : > { %484 = vadd.xlane.f32.xlu0 %v482_v46 }
 0x16d   : > { %486 = vadd.xlane.f32.xlu0 %v483_v47 }
 0x1f2   : > { %v485_v48 = vpop.xlane.xlu0 %484 }
 0x1f3   : > { %489 = vst.msk [vmem:[%s1216_s5] sm:$0xff] %vm488_vm0, %v485_v48 }
 0x1f6   : > { %v487_v49 = vpop.xlane.xlu0 %486 }
 0x1f7   : > { %490 = vst.msk [vmem:[%s1216_s5 + $0x8] sm:$0xff] %vm488_vm0, %v487_v49 }
 0x1f8 PF: > { %s17_s22 = sadd.s32 1, %s994_s22   ;;  %s1299_s3 = sld [smem:[#allocation12_spill]] }
 0x1f9   : > { %p14_p13 = scmp.ge.s32.totalorder %s17_s22, 6   ;;  %s1300_s12 = smov %s958_s13 }
 0x1fa   : > { %s1301_s13 = smov %s962_s14  ;;  %s1302_s14 = smov %s1163_s29 }
 0x1fb   : > { %s1303_s15 = smov %s970_s16  ;;  %s1304_s16 = smov %s974_s17 }
 0x1fc   : > { %s1305_s17 = smov %s1109_s18  ;;  %s1307_s19 = smov %s990_s21 }
 0x1fd   : > { %s1308_s20 = smov %s1311_s23  ;;  %s1309_s21 = smov %s1315_s24 }
 0x1fe   : > { %s1306_s18 = smov %s1299_s3  ;;  %16 = sbr.rel (!%p14_p13) target bundleno = 10 (0xa), region = 98 }
 0x203   :  { %521 = vsyncpa [#allocation4], 1 }
 0x204   :  { %523 = vsyncpa [#allocation4 + $0x1], 1 }
 0x205   :  { %524 = vsyncpa [#allocation6], 1 }
 0x206   :  { %526 = vsyncpa [#allocation6 + $0x1], 1 }

</bundles_post_ra>
